<compile_context>
chip_gen: v6e
topology: v6e:2x2x1
jax: 0.10.0
libtpu: 0.0.40
codegen_flags: <defaults>
</compile_context>

<pallas_src>
import functools

import jax
import jax.numpy as jnp
from jax.experimental import pallas as pl
from jax.experimental.pallas import tpu as pltpu


HIDDEN_SIZE = 128
INTERMEDIATE_SIZE = 256
RMS_NORM_EPS = 1e-6
FFN_BIAS = True  # biases are implemented; set False -> zero bias arrays


def _round_up(x, m):
    return ((x + m - 1) // m) * m


def _ffn_kernel(x_ref, nw_ref, wgu_ref, bgu_ref, wd_ref, bd_ref, o_ref, *,
                eps, inter):
    """Fused RMSNorm -> (gate|up) matmul -> SiLU(gate)*up -> down matmul."""
    # ---- RMSNorm in f32 (exactly as the PyTorch module) ----
    x = x_ref[...].astype(jnp.float32)                        # (tm, H)
    variance = jnp.mean(x * x, axis=-1, keepdims=True)        # (tm, 1)
    x_norm = x * jax.lax.rsqrt(variance + eps)                # (tm, H)
    x_norm = nw_ref[...].astype(jnp.float32) * x_norm         # (tm, H) f32
    x_norm = x_norm.astype(wgu_ref.dtype)                     # MXU input dtype

    # ---- fused gate+up projection: one (tm,H)@(H,2I) matmul on the MXU ----
    gu = jnp.dot(x_norm, wgu_ref[...],
                 preferred_element_type=jnp.float32)          # (tm, 2I) f32
    gu = gu + bgu_ref[...].astype(jnp.float32)
    gate = gu[:, :inter]                                      # (tm, I)
    up = gu[:, inter:]                                        # (tm, I)

    # ---- SiLU(gate) * up in f32 (EUP handles the sigmoid) ----
    act = (gate * jax.lax.logistic(gate)) * up                # (tm, I) f32
    act = act.astype(wd_ref.dtype)

    # ---- down projection ----
    down = jnp.dot(act, wd_ref[...],
                   preferred_element_type=jnp.float32)        # (tm, H) f32
    down = down + bd_ref[...].astype(jnp.float32)
    o_ref[...] = down.astype(o_ref.dtype)


def simplified_llama4_ffn(hidden_states, params, *, eps=RMS_NORM_EPS, tm=256):
    """hidden_states: (B, S, H).  params: dict from init_params().

    Weights may be f32 or bf16 (matmuls accumulate in f32 either way; RMSNorm
    and SiLU math always run in f32).  For large token counts sweep tm in
    [256, 1024]; keep T // tm >= 2 so the "parallel" grid axis can shard
    across both v7x TensorCores.
    """
    B, S, H = hidden_states.shape
    T = B * S
    x2d = hidden_states.reshape(T, H)

    # Fuse gate/up into a single (H, 2I) weight -> one wide matmul per tile.
    wgu = jnp.concatenate([params["gate_w"], params["up_w"]], axis=1)  # (H,2I)
    bgu = jnp.concatenate([params["gate_b"], params["up_b"]], axis=1)  # (1,2I)
    wd = params["down_w"]                                              # (I,H)
    bd = params["down_b"]                                              # (1,H)
    nw = params["norm_w"]                                              # (1,H)
    I = params["gate_w"].shape[1]

    # Token tile: as large as requested but no bigger than the sublane-rounded
    # token count; pad tokens to a multiple of the tile (padded rows are
    # sliced off afterwards), so any (B, S) works.
    tm_eff = max(8, min(tm, _round_up(T, 8)))
    T_pad = _round_up(T, tm_eff)
    if T_pad != T:
        x2d = jnp.pad(x2d, ((0, T_pad - T), (0, 0)))

    kernel = functools.partial(_ffn_kernel, eps=eps, inter=I)

    # Scheduler hint (cheap, helps overlap when this sits inside a larger jit).
    act_bytes = x2d.dtype.itemsize
    w_bytes = wgu.dtype.itemsize
    n_weight_elems = wgu.size + bgu.size + wd.size + bd.size + nw.size
    cost = pl.CostEstimate(
        flops=2 * T_pad * H * (2 * I) + 2 * T_pad * I * H,
        transcendentals=T_pad * I + T_pad,          # sigmoid + rsqrt
        bytes_accessed=2 * T_pad * H * act_bytes + n_weight_elems * w_bytes)

    # VMEM budget: double-buffered x/out tiles + resident weights + f32
    # intermediates, with headroom; capped at v7x's 64 MiB physical VMEM.
    vmem_est = (2 * 2 * tm_eff * H * act_bytes
                + 2 * n_weight_elems * w_bytes
                + tm_eff * (2 * I + 2 * H) * 4)
    vmem_limit = int(min(64 * 1024 * 1024,
                         max(32 * 1024 * 1024, 2 * vmem_est)))

    out2d = pl.pallas_call(
        kernel,
        out_shape=jax.ShapeDtypeStruct((T_pad, H), hidden_states.dtype),
        grid_spec=pltpu.PrefetchScalarGridSpec(
            num_scalar_prefetch=0,
            grid=(T_pad // tm_eff,),
            in_specs=[
                pl.BlockSpec((tm_eff, H), lambda i: (i, 0)),   # x tile
                pl.BlockSpec((1, H), lambda i: (0, 0)),        # rmsnorm weight
                pl.BlockSpec((H, 2 * I), lambda i: (0, 0)),    # fused gate|up W
                pl.BlockSpec((1, 2 * I), lambda i: (0, 0)),    # fused gate|up b
                pl.BlockSpec((I, H), lambda i: (0, 0)),        # down_proj W
                pl.BlockSpec((1, H), lambda i: (0, 0)),        # down_proj b
            ],
            out_specs=pl.BlockSpec((tm_eff, H), lambda i: (i, 0)),
        ),
        compiler_params=pltpu.CompilerParams(
            dimension_semantics=("parallel",),
            vmem_limit_bytes=vmem_limit),
        cost_estimate=cost,
    )(x2d, nw, wgu, bgu, wd, bd)

    if T_pad != T:
        out2d = out2d[:T]
    return out2d.reshape(B, S, H)


def init_params(key, hidden_size, intermediate_size, ffn_bias,
                dtype=jnp.float32):
    """Deterministic synthetic parameters (nn.Linear shapes, pre-transposed
    to (in, out) for the kernel)."""
    k1, k2, k3, k4, k5, k6 = jax.random.split(key, 6)
    scale_h = 1.0 / jnp.sqrt(hidden_size).astype(jnp.float32)
    scale_i = 1.0 / jnp.sqrt(intermediate_size).astype(jnp.float32)
    params = {
        "norm_w": jnp.ones((1, hidden_size), dtype),
        "gate_w": (jax.random.normal(k1, (hidden_size, intermediate_size))
                   * scale_h).astype(dtype),
        "up_w":   (jax.random.normal(k2, (hidden_size, intermediate_size))
                   * scale_h).astype(dtype),
        "down_w": (jax.random.normal(k3, (intermediate_size, hidden_size))
                   * scale_i).astype(dtype),
    }
    if ffn_bias:
        params["gate_b"] = (jax.random.normal(k4, (1, intermediate_size))
                            * 0.01).astype(dtype)
        params["up_b"] = (jax.random.normal(k5, (1, intermediate_size))
                          * 0.01).astype(dtype)
        params["down_b"] = (jax.random.normal(k6, (1, hidden_size))
                            * 0.01).astype(dtype)
    else:
        params["gate_b"] = jnp.zeros((1, intermediate_size), dtype)
        params["up_b"] = jnp.zeros((1, intermediate_size), dtype)
        params["down_b"] = jnp.zeros((1, hidden_size), dtype)
    return params


def reference_ffn(x, params, eps=RMS_NORM_EPS):
    """Pure-JAX reference mirroring the PyTorch forward."""
    in_dtype = x.dtype
    xf = x.astype(jnp.float32)
    var = jnp.mean(xf * xf, axis=-1, keepdims=True)
    xn = (params["norm_w"][0].astype(jnp.float32)
          * (xf * jax.lax.rsqrt(var + eps))).astype(in_dtype)
    gate = xn @ params["gate_w"] + params["gate_b"][0]
    up = xn @ params["up_w"] + params["up_b"][0]
    act = (gate * jax.nn.sigmoid(gate)) * up
    return (act @ params["down_w"] + params["down_b"][0]).astype(in_dtype)


if __name__ == "__main__":
    key = jax.random.PRNGKey(0)
    kx, kp, kx2 = jax.random.split(key, 3)

    params = init_params(kp, HIDDEN_SIZE, INTERMEDIATE_SIZE, FFN_BIAS,
                         dtype=jnp.float32)

    # Small shape consistent with the module (B=2, S=8, hidden=128).
    B, S = 2, 8
    x = jax.random.normal(kx, (B, S, HIDDEN_SIZE), dtype=jnp.float32)
    out = jax.block_until_ready(simplified_llama4_ffn(x, params))
    ref = reference_ffn(x, params)
    assert out.shape == (B, S, HIDDEN_SIZE)
    err = float(jnp.max(jnp.abs(out - ref)))
    assert err < 2e-4, err

    # Exercise padding + a multi-step grid (ragged token count, tm=256).
    B2, S2 = 4, 100
    x2 = jax.random.normal(kx2, (B2, S2, HIDDEN_SIZE), dtype=jnp.float32)
    out2 = jax.block_until_ready(simplified_llama4_ffn(x2, params))
    ref2 = reference_ffn(x2, params)
    err2 = float(jnp.max(jnp.abs(out2 - ref2)))
    assert err2 < 2e-4, err2

    print("KERNEL_OK")
</pallas_src>

<mosaic_0001>
module attributes {stable_mosaic.version = 11 : i64} {
  func.func @_ffn_kernel(%arg0: i32, %arg1: memref<16x128xf32, #tpu.memory_space<vmem>>, %arg2: memref<1x128xf32, #tpu.memory_space<vmem>>, %arg3: memref<128x512xf32, #tpu.memory_space<vmem>>, %arg4: memref<1x512xf32, #tpu.memory_space<vmem>>, %arg5: memref<256x128xf32, #tpu.memory_space<vmem>>, %arg6: memref<1x128xf32, #tpu.memory_space<vmem>>, %arg7: memref<16x128xf32, #tpu.memory_space<vmem>>) attributes {dimension_semantics = [#tpu.dimension_semantics<parallel>], iteration_bounds = array<i64: 1>, scalar_prefetch = 0 : i64, scratch_operands = 0 : i64, tpu.core_type = #tpu.core_type<tc>, window_params = [{transform_indices = @transform_0, window_bounds = array<i64: 16, 128>}, {pipeline_mode = #tpu.pipeline_mode<synchronous>, transform_indices = @transform_1, window_bounds = array<i64: 1, 128>}, {pipeline_mode = #tpu.pipeline_mode<synchronous>, transform_indices = @transform_2, window_bounds = array<i64: 128, 512>}, {pipeline_mode = #tpu.pipeline_mode<synchronous>, transform_indices = @transform_3, window_bounds = array<i64: 1, 512>}, {pipeline_mode = #tpu.pipeline_mode<synchronous>, transform_indices = @transform_4, window_bounds = array<i64: 256, 128>}, {pipeline_mode = #tpu.pipeline_mode<synchronous>, transform_indices = @transform_5, window_bounds = array<i64: 1, 128>}, {transform_indices = @transform_6, window_bounds = array<i64: 16, 128>}]} {
    %c0 = arith.constant 0 : index
    %c0_0 = arith.constant 0 : index
    %0 = vector.load %arg1[%c0, %c0_0] : memref<16x128xf32, #tpu.memory_space<vmem>>, vector<16x128xf32>
    %1 = arith.mulf %0, %0 : vector<16x128xf32>
    %cst = arith.constant dense<0.000000e+00> : vector<16xf32>
    %2 = vector.multi_reduction <add>, %1, %cst [1] : vector<16x128xf32> to vector<16xf32>
    %3 = vector.shape_cast %2 : vector<16xf32> to vector<16x1xf32>
    %cst_1 = arith.constant 1.280000e+02 : f32
    %4 = vector.broadcast %cst_1 : f32 to vector<16x1xf32>
    %5 = arith.divf %3, %4 : vector<16x1xf32>
    %cst_2 = arith.constant 9.99999997E-7 : f32
    %6 = vector.broadcast %cst_2 : f32 to vector<16x1xf32>
    %7 = arith.addf %5, %6 : vector<16x1xf32>
    %8 = math.rsqrt %7 : vector<16x1xf32>
    %9 = vector.broadcast %8 : vector<16x1xf32> to vector<16x128xf32>
    %10 = arith.mulf %0, %9 : vector<16x128xf32>
    %c0_3 = arith.constant 0 : index
    %c0_4 = arith.constant 0 : index
    %11 = vector.load %arg2[%c0_3, %c0_4] : memref<1x128xf32, #tpu.memory_space<vmem>>, vector<1x128xf32>
    %12 = vector.broadcast %11 : vector<1x128xf32> to vector<16x128xf32>
    %13 = arith.mulf %12, %10 : vector<16x128xf32>
    %c0_5 = arith.constant 0 : index
    %c0_6 = arith.constant 0 : index
    %14 = vector.load %arg3[%c0_5, %c0_6] : memref<128x512xf32, #tpu.memory_space<vmem>>, vector<128x512xf32>
    %cst_7 = arith.constant dense<0.000000e+00> : vector<16x512xf32>
    %15 = tpu.matmul %13, %14, %cst_7 {dimension_numbers = #tpu.dot_dimension_numbers<[1], [0], [0], [1], [0, 0, 1, 1], [], []>} : vector<16x128xf32>, vector<128x512xf32>, vector<16x512xf32> -> vector<16x512xf32>
    %c0_8 = arith.constant 0 : index
    %c0_9 = arith.constant 0 : index
    %16 = vector.load %arg4[%c0_8, %c0_9] : memref<1x512xf32, #tpu.memory_space<vmem>>, vector<1x512xf32>
    %17 = vector.broadcast %16 : vector<1x512xf32> to vector<16x512xf32>
    %18 = arith.addf %15, %17 : vector<16x512xf32>
    %19 = vector.extract_strided_slice %18 {offsets = [0, 0], sizes = [16, 256], strides = [1, 1]} : vector<16x512xf32> to vector<16x256xf32>
    %20 = vector.extract_strided_slice %18 {offsets = [0, 256], sizes = [16, 256], strides = [1, 1]} : vector<16x512xf32> to vector<16x256xf32>
    %21 = arith.negf %19 : vector<16x256xf32>
    %22 = math.exp %21 : vector<16x256xf32>
    %cst_10 = arith.constant 1.000000e+00 : f32
    %23 = vector.broadcast %cst_10 : f32 to vector<16x256xf32>
    %24 = arith.addf %23, %22 : vector<16x256xf32>
    %25 = arith.divf %23, %24 : vector<16x256xf32>
    %26 = arith.mulf %19, %25 : vector<16x256xf32>
    %27 = arith.mulf %26, %20 : vector<16x256xf32>
    %c0_11 = arith.constant 0 : index
    %c0_12 = arith.constant 0 : index
    %28 = vector.load %arg5[%c0_11, %c0_12] : memref<256x128xf32, #tpu.memory_space<vmem>>, vector<256x128xf32>
    %cst_13 = arith.constant dense<0.000000e+00> : vector<16x128xf32>
    %29 = tpu.matmul %27, %28, %cst_13 {dimension_numbers = #tpu.dot_dimension_numbers<[1], [0], [0], [1], [0, 0, 1, 1], [], []>} : vector<16x256xf32>, vector<256x128xf32>, vector<16x128xf32> -> vector<16x128xf32>
    %c0_14 = arith.constant 0 : index
    %c0_15 = arith.constant 0 : index
    %30 = vector.load %arg6[%c0_14, %c0_15] : memref<1x128xf32, #tpu.memory_space<vmem>>, vector<1x128xf32>
    %31 = vector.broadcast %30 : vector<1x128xf32> to vector<16x128xf32>
    %32 = arith.addf %29, %31 : vector<16x128xf32>
    %c0_16 = arith.constant 0 : index
    %c0_17 = arith.constant 0 : index
    %33 = vector.load %arg7[%c0_16, %c0_17] : memref<16x128xf32, #tpu.memory_space<vmem>>, vector<16x128xf32>
    tpu.vector_store %arg7[%c0_16, %c0_17], %32 {strides = array<i32>} : memref<16x128xf32, #tpu.memory_space<vmem>>, vector<16x128xf32>,
    return
  }
  func.func @transform_0(%arg0: i32) -> (i32, i32) {
    %c0_i32 = arith.constant 0 : i32
    %c0_i32_0 = arith.constant 0 : i32
    return %arg0, %c0_i32 : i32, i32
  }
  func.func @transform_1(%arg0: i32) -> (i32, i32) {
    %c0_i32 = arith.constant 0 : i32
    %c0_i32_0 = arith.constant 0 : i32
    %c0_i32_1 = arith.constant 0 : i32
    return %c0_i32, %c0_i32_0 : i32, i32
  }
  func.func @transform_2(%arg0: i32) -> (i32, i32) {
    %c0_i32 = arith.constant 0 : i32
    %c0_i32_0 = arith.constant 0 : i32
    %c0_i32_1 = arith.constant 0 : i32
    return %c0_i32, %c0_i32_0 : i32, i32
  }
  func.func @transform_3(%arg0: i32) -> (i32, i32) {
    %c0_i32 = arith.constant 0 : i32
    %c0_i32_0 = arith.constant 0 : i32
    %c0_i32_1 = arith.constant 0 : i32
    return %c0_i32, %c0_i32_0 : i32, i32
  }
  func.func @transform_4(%arg0: i32) -> (i32, i32) {
    %c0_i32 = arith.constant 0 : i32
    %c0_i32_0 = arith.constant 0 : i32
    %c0_i32_1 = arith.constant 0 : i32
    return %c0_i32, %c0_i32_0 : i32, i32
  }
  func.func @transform_5(%arg0: i32) -> (i32, i32) {
    %c0_i32 = arith.constant 0 : i32
    %c0_i32_0 = arith.constant 0 : i32
    %c0_i32_1 = arith.constant 0 : i32
    return %c0_i32, %c0_i32_0 : i32, i32
  }
  func.func @transform_6(%arg0: i32) -> (i32, i32) {
    %c0_i32 = arith.constant 0 : i32
    %c0_i32_0 = arith.constant 0 : i32
    return %arg0, %c0_i32 : i32, i32
  }
}

</mosaic_0001>

<bundles_post_ra>
// kernel: tpu_custom_call.1
= control target key start
LH: loop header
LB: loop body
LE: loop exit
PB: predicated region body
PF: predicated region fallthrough
CT: control target
= control target key end

     0   :  { %11 = vsyncpa [#allocation3], 0  ;;  %s772_s0 = inlined_call_operand.hbm [shape: f32[16,128], index: 0, kind: input, shape index: {}]   ;;  %s773_s1 = inlined_call_operand.vmem [shape: f32[1,128], index: 1, kind: input, shape index: {}]   ;;  %s774_s2 = inlined_call_operand.hbm [shape: f32[128,512], index: 2, kind: input, shape index: {}]   ;;  %s775_s3 = inlined_call_operand.vmem [shape: f32[1,512], index: 3, kind: input, shape index: {}]   ;;  %s776_s4 = inlined_call_operand.hbm [shape: f32[256,128], index: 4, kind: input, shape index: {}]   ;;  %s777_s5 = inlined_call_operand.vmem [shape: f32[1,128], index: 5, kind: input, shape index: {}]   ;;  %s778_s6 = inlined_call_operand.hbm [shape: f32[16,128], index: 6, kind: output, shape index: {}]  }
   0x1   :  { %12 = vsyncpa [#allocation6], 0 }
   0x2   :  { %13 = vsyncpa [#allocation4], 0  ;;  %s688_s21 = smov [#allocation5]  }
   0x3   :  { %s33_s22 = sshll.u32 %s688_s21, 4  ;;  %s34_s22 = int_to_ptr.vmem [resolvable:$true] %s33_s22 }
   0x4   :  { %s610_s23 = scalar_lea.vmem %s34_s22, 8192  ;;  %p615_p1 = scmp.lt.s32.totalorder %s34_s22, %s34_s22 }
   0x5   :  { %p611_p0 = scmp.ne.s32.totalorder %s34_s22, %s610_s23  ;;  %p616_p2 = scmp.lt.s32.totalorder %s610_s23, %s610_s23 }
   0x7   :  { %p617_p3 = por %p616_p2, %p615_p1 }
   0x9   :  { %p618_p4 = pnand %p617_p3, %p611_p0 }
   0xb   :  { %621 = shalt.err (!%p618_p4)
}
   0xc   :  { %s689_s24 = smov 512   ;;  %s690_s25 = smov 32  }
   0xd   :  { %39 = dma.hbm_to_vmem [thread:$0]  %s774_s2, 8192, %s34_s22, [#allocation6], %s689_s24, %s689_s24, %s690_s25  }
   0xe   :  { %s691_s28 = smov [#allocation2]  }
   0xf   :  { %s19_s29 = sshll.u32 %s691_s28, 4  ;;  %s20_s29 = int_to_ptr.vmem [resolvable:$true] %s19_s29 }
  0x10   :  { %s630_s30 = scalar_lea.vmem %s20_s29, 256  ;;  %p635_p6 = scmp.lt.s32.totalorder %s20_s29, %s20_s29 }
  0x11   :  { %p631_p5 = scmp.ne.s32.totalorder %s20_s29, %s630_s30  ;;  %p636_p7 = scmp.lt.s32.totalorder %s630_s30, %s630_s30 }
  0x13   :  { %p637_p8 = por %p636_p7, %p635_p6 }
  0x15   :  { %p638_p9 = pnand %p637_p8, %p631_p5 }
  0x17   :  { %641 = shalt.err (!%p638_p9)
}
  0x18   :  { %s692_s7 = smov 128   ;;  %s693_s8 = smov 8  }
  0x19   :  { %25 = dma.hbm_to_vmem [thread:$0]  %s772_s0, 256, %s20_s29, [#allocation3], %s692_s7, %s692_s7, %s693_s8  }
  0x1a   :  { %s694_s2 = smov [#allocation7]  }
  0x1b   :  { %s47_s11 = sshll.u32 %s694_s2, 4  ;;  %s48_s11 = int_to_ptr.vmem [resolvable:$true] %s47_s11 }
  0x1c   :  { %s650_s12 = scalar_lea.vmem %s48_s11, 4096  ;;  %p655_p11 = scmp.lt.s32.totalorder %s48_s11, %s48_s11 }
  0x1d   :  { %p651_p10 = scmp.ne.s32.totalorder %s48_s11, %s650_s12  ;;  %p656_p12 = scmp.lt.s32.totalorder %s650_s12, %s650_s12 }
  0x1f   :  { %p657_p13 = por %p656_p12, %p655_p11 }
  0x21   :  { %p658_p0 = pnand %p657_p13, %p651_p10 }
  0x23   :  { %661 = shalt.err (!%p658_p0)
}
  0x24   :  { %53 = dma.hbm_to_vmem [thread:$0]  %s776_s4, 4096, %s48_s11, [#allocation6], %s692_s7, %s692_s7, %s693_s8  }
  0x25   :  { %682 = dma.done.wait [#allocation3], 256  }
  0x26   :  { %683 = vsyncadd [#allocation3], 4294967040 }
  0x27   :  { %684 = dma.done.wait [#allocation6], 12288  }
  0x28   :  { %685 = vsyncadd [#allocation6], 4294955008  ;;  %v747_v0 = vld [vmem:[#allocation2] sm:$0xff]  ;;  %v749_v1 = vld [vmem:[#allocation2 + $0x8] sm:$0xff]  ;;  %s696_s17 = smov [#allocation8]  }
  0x29   :  { %v152_v2 = vld [vmem:[#allocation5 + $0x1e8] sm:$0xff]  ;;  %v67_v3 = vmul.f32 %v747_v0, %v747_v0  ;;  %v154_v4 = vld [vmem:[#allocation5 + $0x1f8] sm:$0xff]  ;;  %v151_v5 = vld [vmem:[#allocation5 + $0x1e0] sm:$0xff]  ;;  %v68_v10 = vmul.f32 %v749_v1, %v749_v1  ;;  %s484_s18 = sshll.u32 %s696_s17, 4  ;;  %s485_s18 = int_to_ptr.vmem [resolvable:$true] %s484_s18 }
  0x2a   :  { %177 = vmatprep.subr.mxu0 %v152_v2  ;;  %v153_v6 = vld [vmem:[#allocation5 + $0x1f0] sm:$0xff]  ;;  %254 = vmatprep.subr.mxu1 %v154_v4  ;;  %v148_v7 = vld [vmem:[#allocation5 + $0x1c8] sm:$0xff]  ;;  %v150_v8 = vld [vmem:[#allocation5 + $0x1d8] sm:$0xff]  ;;  %s662_s19 = scalar_lea.vmem %s485_s18, 256  ;;  %p667_p2 = scmp.lt.s32.totalorder %s485_s18, %s485_s18 }
  0x2b   :  { %178 = vmatpush1.msra.mxu0 %v151_v5  ;;  %v147_v9 = vld [vmem:[#allocation5 + $0x1c0] sm:$0xff]  ;;  %69 = vadd.xlane.f32.xlu0 %v67_v3  ;;  %v149_v11 = vld [vmem:[#allocation5 + $0x1d0] sm:$0xff]  ;;  %v144_v12 = vld [vmem:[#allocation5 + $0x1a8] sm:$0xff]  ;;  %p663_p1 = scmp.ne.s32.totalorder %s485_s18, %s662_s19  ;;  %p668_p3 = scmp.lt.s32.totalorder %s662_s19, %s662_s19 }
  0x2c   :  { %255 = vmatpush1.msra.mxu1 %v153_v6  ;;  %v146_v13 = vld [vmem:[#allocation5 + $0x1b8] sm:$0xff]  ;;  %179 = vmatprep.subr.mxu0 %v148_v7  ;;  %v143_v14 = vld [vmem:[#allocation5 + $0x1a0] sm:$0xff]  ;;  %v145_v15 = vld [vmem:[#allocation5 + $0x1b0] sm:$0xff]  ;;  %v695_v6 = vmov 0.0  }
  0x2d   :  { %256 = vmatprep.subr.mxu1 %v150_v8  ;;  %180 = vmatpush1.msra.mxu0 %v147_v9  ;;  %v140_v16 = vld [vmem:[#allocation5 + $0x188] sm:$0xff]  ;;  %v142_v17 = vld [vmem:[#allocation5 + $0x198] sm:$0xff]  ;;  %v139_v18 = vld [vmem:[#allocation5 + $0x180] sm:$0xff]  ;;  %p669_p4 = por %p668_p3, %p667_p2 }
  0x2e   :  { %257 = vmatpush1.msra.mxu1 %v149_v11  ;;  %181 = vmatprep.subr.mxu0 %v144_v12  ;;  %v141_v19 = vld [vmem:[#allocation5 + $0x190] sm:$0xff]  ;;  %v136_v20 = vld [vmem:[#allocation5 + $0x168] sm:$0xff]  ;;  %v138_v21 = vld [vmem:[#allocation5 + $0x178] sm:$0xff] }
  0x2f   :  { %258 = vmatprep.subr.mxu1 %v146_v13  ;;  %71 = vadd.xlane.f32.xlu0 %v68_v10  ;;  %v135_v22 = vld [vmem:[#allocation5 + $0x160] sm:$0xff]  ;;  %v137_v23 = vld [vmem:[#allocation5 + $0x170] sm:$0xff]  ;;  %v132_v24 = vld [vmem:[#allocation5 + $0x148] sm:$0xff]  ;;  %p670_p5 = pnand %p669_p4, %p663_p1 }
  0x30   :  { %182 = vmatpush1.msra.mxu0 %v143_v14  ;;  %259 = vmatpush1.msra.mxu1 %v145_v15  ;;  %v134_v25 = vld [vmem:[#allocation5 + $0x158] sm:$0xff]  ;;  %v131_v26 = vld [vmem:[#allocation5 + $0x140] sm:$0xff]  ;;  %v133_v27 = vld [vmem:[#allocation5 + $0x150] sm:$0xff] }
  0x31   :  { %183 = vmatprep.subr.mxu0 %v140_v16  ;;  %260 = vmatprep.subr.mxu1 %v142_v17  ;;  %v128_v28 = vld [vmem:[#allocation5 + $0x128] sm:$0xff]  ;;  %v130_v29 = vld [vmem:[#allocation5 + $0x138] sm:$0xff]  ;;  %v127_v30 = vld [vmem:[#allocation5 + $0x120] sm:$0xff] }
  0x32   :  { %184 = vmatpush1.msra.mxu0 %v139_v18  ;;  %261 = vmatpush1.msra.mxu1 %v141_v19  ;;  %v129_v31 = vld [vmem:[#allocation5 + $0x130] sm:$0xff]  ;;  %v124_v32 = vld [vmem:[#allocation5 + $0x108] sm:$0xff]  ;;  %v126_v33 = vld [vmem:[#allocation5 + $0x118] sm:$0xff] }
  0x33   :  { %185 = vmatprep.subr.mxu0 %v136_v20  ;;  %262 = vmatprep.subr.mxu1 %v138_v21  ;;  %v123_v34 = vld [vmem:[#allocation5 + $0x100] sm:$0xff]  ;;  %v125_v35 = vld [vmem:[#allocation5 + $0x110] sm:$0xff]  ;;  %v120_v36 = vld [vmem:[#allocation5 + $0xe8] sm:$0xff] }
  0x34   :  { %186 = vmatpush1.msra.mxu0 %v135_v22  ;;  %263 = vmatpush1.msra.mxu1 %v137_v23  ;;  %v122_v37 = vld [vmem:[#allocation5 + $0xf8] sm:$0xff]  ;;  %v119_v38 = vld [vmem:[#allocation5 + $0xe0] sm:$0xff]  ;;  %v121_v39 = vld [vmem:[#allocation5 + $0xf0] sm:$0xff] }
  0x35   :  { %187 = vmatprep.subr.mxu0 %v132_v24  ;;  %264 = vmatprep.subr.mxu1 %v134_v25  ;;  %v116_v40 = vld [vmem:[#allocation5 + $0xc8] sm:$0xff]  ;;  %v118_v41 = vld [vmem:[#allocation5 + $0xd8] sm:$0xff]  ;;  %v115_v42 = vld [vmem:[#allocation5 + $0xc0] sm:$0xff] }
  0x36   :  { %188 = vmatpush1.msra.mxu0 %v131_v26  ;;  %265 = vmatpush1.msra.mxu1 %v133_v27  ;;  %v117_v43 = vld [vmem:[#allocation5 + $0xd0] sm:$0xff]  ;;  %v112_v44 = vld [vmem:[#allocation5 + $0xa8] sm:$0xff]  ;;  %v114_v45 = vld [vmem:[#allocation5 + $0xb8] sm:$0xff] }
  0x37   :  { %189 = vmatprep.subr.mxu0 %v128_v28  ;;  %266 = vmatprep.subr.mxu1 %v130_v29  ;;  %v111_v46 = vld [vmem:[#allocation5 + $0xa0] sm:$0xff]  ;;  %v113_v47 = vld [vmem:[#allocation5 + $0xb0] sm:$0xff]  ;;  %v108_v48 = vld [vmem:[#allocation5 + $0x88] sm:$0xff] }
  0x38   :  { %190 = vmatpush1.msra.mxu0 %v127_v30  ;;  %267 = vmatpush1.msra.mxu1 %v129_v31  ;;  %v110_v49 = vld [vmem:[#allocation5 + $0x98] sm:$0xff]  ;;  %v107_v50 = vld [vmem:[#allocation5 + $0x80] sm:$0xff]  ;;  %v109_v51 = vld [vmem:[#allocation5 + $0x90] sm:$0xff] }
  0x39   :  { %191 = vmatprep.subr.mxu0 %v124_v32  ;;  %268 = vmatprep.subr.mxu1 %v126_v33  ;;  %v104_v52 = vld [vmem:[#allocation5 + $0x68] sm:$0xff]  ;;  %v106_v53 = vld [vmem:[#allocation5 + $0x78] sm:$0xff]  ;;  %v103_v54 = vld [vmem:[#allocation5 + $0x60] sm:$0xff] }
  0x3a   :  { %192 = vmatpush1.msra.mxu0 %v123_v34  ;;  %269 = vmatpush1.msra.mxu1 %v125_v35  ;;  %v105_v55 = vld [vmem:[#allocation5 + $0x70] sm:$0xff]  ;;  %v100_v56 = vld [vmem:[#allocation5 + $0x48] sm:$0xff]  ;;  %v102_v57 = vld [vmem:[#allocation5 + $0x58] sm:$0xff] }
  0x3b   :  { %193 = vmatprep.subr.mxu0 %v120_v36  ;;  %270 = vmatprep.subr.mxu1 %v122_v37  ;;  %v99_v58 = vld [vmem:[#allocation5 + $0x40] sm:$0xff]  ;;  %v101_v59 = vld [vmem:[#allocation5 + $0x50] sm:$0xff]  ;;  %v96_v60 = vld [vmem:[#allocation5 + $0x28] sm:$0xff] }
  0x3c   :  { %194 = vmatpush1.msra.mxu0 %v119_v38  ;;  %271 = vmatpush1.msra.mxu1 %v121_v39  ;;  %v98_v61 = vld [vmem:[#allocation5 + $0x38] sm:$0xff]  ;;  %v95_v62 = vld [vmem:[#allocation5 + $0x20] sm:$0xff]  ;;  %v97_v63 = vld [vmem:[#allocation5 + $0x30] sm:$0xff] }
  0x3d   :  { %195 = vmatprep.subr.mxu0 %v116_v40  ;;  %272 = vmatprep.subr.mxu1 %v118_v41  ;;  %v92_v2 = vld [vmem:[#allocation5 + $0x8] sm:$0xff]  ;;  %v94_v3 = vld [vmem:[#allocation5 + $0x18] sm:$0xff]  ;;  %v91_v4 = vld [vmem:[#allocation5] sm:$0xff] }
  0x3e   :  { %196 = vmatpush1.msra.mxu0 %v115_v42  ;;  %273 = vmatpush1.msra.mxu1 %v117_v43  ;;  %v93_v5 = vld [vmem:[#allocation5 + $0x10] sm:$0xff]  ;;  %v394_v20 = vld [vmem:[#allocation7 + $0xf8] sm:$0xff]  ;;  %v392_v23 = vld [vmem:[#allocation7 + $0xe8] sm:$0xff] }
  0x3f   :  { %197 = vmatprep.subr.mxu0 %v112_v44  ;;  %274 = vmatprep.subr.mxu1 %v114_v45  ;;  %v497_v14 = vld [vmem:[%s773_s1] ss:$0 sm:$0xff]  ;;  %v378_v21 = vld [vmem:[#allocation7 + $0x78] sm:$0xff]  ;;  %v391_v24 = vld [vmem:[#allocation7 + $0xe0] sm:$0xff] }
  0x40   :  { %198 = vmatpush1.msra.mxu0 %v111_v46  ;;  %275 = vmatpush1.msra.mxu1 %v113_v47  ;;  %v393_v22 = vld [vmem:[#allocation7 + $0xf0] sm:$0xff]  ;;  %v375_v25 = vld [vmem:[#allocation7 + $0x60] sm:$0xff]  ;;  %v390_v26 = vld [vmem:[#allocation7 + $0xd8] sm:$0xff] }
  0x41   :  { %199 = vmatprep.subr.mxu0 %v108_v48  ;;  %276 = vmatprep.subr.mxu1 %v110_v49  ;;  %v374_v27 = vld [vmem:[#allocation7 + $0x58] sm:$0xff]  ;;  %v389_v28 = vld [vmem:[#allocation7 + $0xd0] sm:$0xff]  ;;  %v388_v30 = vld [vmem:[#allocation7 + $0xc8] sm:$0xff] }
  0x42   :  { %200 = vmatpush1.msra.mxu0 %v107_v50  ;;  %277 = vmatpush1.msra.mxu1 %v109_v51  ;;  %v373_v29 = vld [vmem:[#allocation7 + $0x50] sm:$0xff]  ;;  %v372_v31 = vld [vmem:[#allocation7 + $0x48] sm:$0xff]  ;;  %v387_v32 = vld [vmem:[#allocation7 + $0xc0] sm:$0xff]  ;;  %v157_v50 = vlaneseq }
  0x43   :  { %201 = vmatprep.subr.mxu0 %v104_v52  ;;  %278 = vmatprep.subr.mxu1 %v106_v53  ;;  %v371_v33 = vld [vmem:[#allocation7 + $0x40] sm:$0xff]  ;;  %v386_v34 = vld [vmem:[#allocation7 + $0xb8] sm:$0xff]  ;;  %v385_v36 = vld [vmem:[#allocation7 + $0xb0] sm:$0xff] }
  0x44   :  { %202 = vmatpush1.msra.mxu0 %v103_v54  ;;  %279 = vmatpush1.msra.mxu1 %v105_v55  ;;  %v370_v35 = vld [vmem:[#allocation7 + $0x38] sm:$0xff]  ;;  %v369_v37 = vld [vmem:[#allocation7 + $0x30] sm:$0xff]  ;;  %v384_v38 = vld [vmem:[#allocation7 + $0xa8] sm:$0xff]  ;;  %v158_v51 = vshrl.u32 %v157_v50, 7 }
  0x45   :  { %203 = vmatprep.subr.mxu0 %v100_v56  ;;  %280 = vmatprep.subr.mxu1 %v102_v57  ;;  %v368_v39 = vld [vmem:[#allocation7 + $0x28] sm:$0xff]  ;;  %v383_v40 = vld [vmem:[#allocation7 + $0xa0] sm:$0xff]  ;;  %v382_v42 = vld [vmem:[#allocation7 + $0x98] sm:$0xff] }
  0x46   :  { %204 = vmatpush1.msra.mxu0 %v99_v58  ;;  %281 = vmatpush1.msra.mxu1 %v101_v59  ;;  %v367_v41 = vld [vmem:[#allocation7 + $0x20] sm:$0xff]  ;;  %v366_v43 = vld [vmem:[#allocation7 + $0x18] sm:$0xff]  ;;  %v381_v44 = vld [vmem:[#allocation7 + $0x90] sm:$0xff]  ;;  %v159_v52 = vsub.s32 0, %v158_v51  ;;  %v163_v54 = vsub.s32 1, %v158_v51 }
  0x47   :  { %205 = vmatprep.subr.mxu0 %v96_v60  ;;  %282 = vmatprep.subr.mxu1 %v98_v61  ;;  %v365_v45 = vld [vmem:[#allocation7 + $0x10] sm:$0xff]  ;;  %v380_v46 = vld [vmem:[#allocation7 + $0x88] sm:$0xff]  ;;  %v379_v48 = vld [vmem:[#allocation7 + $0x80] sm:$0xff] }
  0x48   :  { %206 = vmatpush1.msra.mxu0 %v95_v62  ;;  %283 = vmatpush1.msra.mxu1 %v97_v63  ;;  %v364_v47 = vld [vmem:[#allocation7 + $0x8] sm:$0xff]  ;;  %v363_v49 = vld [vmem:[#allocation7] sm:$0xff]  ;;  %v155_v53 = vld [vmem:[%s775_s3] sm:$0xf] }
  0x49   :  { %207 = vmatprep.subr.mxu0 %v92_v2  ;;  %284 = vmatprep.subr.mxu1 %v94_v3  ;;  %v160_v55 = vrot.slane %v155_v53, %v159_v52  ;;  %v164_v56 = vrot.slane %v155_v53, %v163_v54 }
  0x4a   :  { %208 = vmatpush1.msra.mxu0 %v91_v4  ;;  %241 = vmatprep.mubr.f32.mxu0 %v695_v6 }
  0x4b   :  { %285 = vmatpush1.msra.mxu1 %v93_v5  ;;  %318 = vmatprep.mubr.f32.mxu1 %v695_v6 }
  0x4c   :  { %503 = vmatprep.subr.mxu0 %v394_v20  ;;  %541 = vmatprep.subr.mxu1 %v394_v20 }
  0xb4   :  { %v70_v7 = vpop.xlane.xlu0 %69 }
  0xb5   :  { %v74_v8 = vmul.f32 0.0078125, %v70_v7 }
  0xb7   :  { %v76_v9 = vadd.f32 1e-06, %v74_v8 }
  0xb8   :  { %v72_v10 = vpop.xlane.xlu0 %71 }
  0xb9   :  { %582 = vrsqrt.f32 %v76_v9  ;;  %v75_v11 = vmul.f32 0.0078125, %v72_v10 }
  0xbb   :  { %v77_v12 = vadd.f32 1e-06, %v75_v11 }
  0xbd   :  { %584 = vrsqrt.f32 %v77_v12 }
  0xc6   :  { %v583_v13 = vpop.eup %582 }
  0xc7   :  { %v80_v15 = vmul.f32 %v583_v13, %v747_v0  ;;  %v377_v0 = vld [vmem:[#allocation7 + $0x70] sm:$0xff] }
  0xc9   :  { %v89_v16 = vmul.f32 %v497_v14, %v80_v15 }
  0xca   :  { %v585_v17 = vpop.eup %584 }
  0xcb   :  { %242 = vmatmul.mubr.f32.vlgmr.msra.gmra.mxu0 %v89_v16  ;;  %319 = vmatmul.mubr.f32.vlgmr.msra.gmra.mxu1 %v89_v16  ;;  %v81_v18 = vmul.f32 %v585_v17, %v749_v1  ;;  %v376_v1 = vld [vmem:[#allocation7 + $0x68] sm:$0xff]  ;;  %v171_v16 = vsub.s32 3, %v158_v51  ;;  %v167_v17 = vsub.s32 2, %v158_v51 }
  0xcc   :  { %247 = vmatprep.mubr.f32.mxu0 %v695_v6  ;;  %324 = vmatprep.mubr.f32.mxu1 %v695_v6 }
  0xcd   :  { %v90_v19 = vmul.f32 %v497_v14, %v81_v18  ;;  %504 = vmatpush3.msra.mxu0 %v378_v21  ;;  %557 = vmatpush3.msra.mxu1 %v378_v21  ;;  %v168_v21 = vrot.slane %v155_v53, %v167_v17 }
  0xce   :  { %505 = vmatprep.subr.mxu0 %v393_v22  ;;  %542 = vmatprep.subr.mxu1 %v393_v22 }
  0xcf   :  { %248 = vmatmul.mubr.f32.gmra.mxu0 %v90_v19  ;;  %325 = vmatmul.mubr.f32.gmra.mxu1 %v90_v19  ;;  %v172_v19 = vrot.slane %v155_v53, %v171_v16 }
  0xd0   :  { %506 = vmatpush3.msra.mxu0 %v377_v0  ;;  %558 = vmatpush3.msra.mxu1 %v377_v0 }
  0xd1   :  { %507 = vmatprep.subr.mxu0 %v392_v23  ;;  %543 = vmatprep.subr.mxu1 %v392_v23 }
  0xd2   :  { %508 = vmatpush3.msra.mxu0 %v376_v1  ;;  %559 = vmatpush3.msra.mxu1 %v376_v1 }
  0xd3   :  { %509 = vmatprep.subr.mxu0 %v391_v24  ;;  %544 = vmatprep.subr.mxu1 %v391_v24 }
  0xd4   :  { %510 = vmatpush3.msra.mxu0 %v375_v25  ;;  %560 = vmatpush3.msra.mxu1 %v375_v25 }
  0xd5   :  { %511 = vmatprep.subr.mxu0 %v390_v26  ;;  %545 = vmatprep.subr.mxu1 %v390_v26 }
  0xd6   :  { %512 = vmatpush3.msra.mxu0 %v374_v27  ;;  %561 = vmatpush3.msra.mxu1 %v374_v27 }
  0xd7   :  { %513 = vmatprep.subr.mxu0 %v389_v28  ;;  %546 = vmatprep.subr.mxu1 %v389_v28 }
  0xd8   :  { %514 = vmatpush3.msra.mxu0 %v373_v29  ;;  %562 = vmatpush3.msra.mxu1 %v373_v29 }
  0xd9   :  { %515 = vmatprep.subr.mxu0 %v388_v30  ;;  %547 = vmatprep.subr.mxu1 %v388_v30 }
  0xda   :  { %516 = vmatpush3.msra.mxu0 %v372_v31  ;;  %563 = vmatpush3.msra.mxu1 %v372_v31 }
  0xdb   :  { %517 = vmatprep.subr.mxu0 %v387_v32  ;;  %548 = vmatprep.subr.mxu1 %v387_v32 }
  0xdc   :  { %518 = vmatpush3.msra.mxu0 %v371_v33  ;;  %564 = vmatpush3.msra.mxu1 %v371_v33 }
  0xdd   :  { %519 = vmatprep.subr.mxu0 %v386_v34  ;;  %549 = vmatprep.subr.mxu1 %v386_v34 }
  0xde   :  { %520 = vmatpush3.msra.mxu0 %v370_v35  ;;  %565 = vmatpush3.msra.mxu1 %v370_v35 }
  0xdf   :  { %521 = vmatprep.subr.mxu0 %v385_v36  ;;  %550 = vmatprep.subr.mxu1 %v385_v36 }
  0xe0   :  { %522 = vmatpush3.msra.mxu0 %v369_v37  ;;  %566 = vmatpush3.msra.mxu1 %v369_v37 }
  0xe1   :  { %523 = vmatprep.subr.mxu0 %v384_v38  ;;  %551 = vmatprep.subr.mxu1 %v384_v38  ;;  %v502_v38 = vld [vmem:[%s777_s5] ss:$0 sm:$0xff] }
  0xe2   :  { %524 = vmatpush3.msra.mxu0 %v368_v39  ;;  %567 = vmatpush3.msra.mxu1 %v368_v39 }
  0xe3   :  { %525 = vmatprep.subr.mxu0 %v383_v40  ;;  %552 = vmatprep.subr.mxu1 %v383_v40 }
  0xe4   :  { %526 = vmatpush3.msra.mxu0 %v367_v41  ;;  %568 = vmatpush3.msra.mxu1 %v367_v41 }
  0xe5   :  { %527 = vmatprep.subr.mxu0 %v382_v42  ;;  %553 = vmatprep.subr.mxu1 %v382_v42 }
  0xe6   :  { %528 = vmatpush3.msra.mxu0 %v366_v43  ;;  %569 = vmatpush3.msra.mxu1 %v366_v43 }
  0xe7   :  { %529 = vmatprep.subr.mxu0 %v381_v44  ;;  %554 = vmatprep.subr.mxu1 %v381_v44 }
  0xe8   :  { %530 = vmatpush3.msra.mxu0 %v365_v45  ;;  %570 = vmatpush3.msra.mxu1 %v365_v45 }
  0xe9   :  { %531 = vmatprep.subr.mxu0 %v380_v46  ;;  %555 = vmatprep.subr.mxu1 %v380_v46 }
  0xea   :  { %532 = vmatpush3.msra.mxu0 %v364_v47  ;;  %571 = vmatpush3.msra.mxu1 %v364_v47 }
  0xeb   :  { %533 = vmatprep.subr.mxu0 %v379_v48  ;;  %556 = vmatprep.subr.mxu1 %v379_v48 }
  0xec   :  { %534 = vmatpush3.msra.mxu0 %v363_v49  ;;  %572 = vmatpush3.msra.mxu1 %v363_v49 }
 0x18b   :  { %v243_v57 = vpop.f32.mrf.mxu0  ;;  %v320_v15 = vpop.f32.mrf.mxu1 }
 0x18c   :  { %v244_v58 = vadd.f32 %v243_v57, %v160_v55  ;;  %v321_v26 = vadd.f32 %v320_v15, %v168_v21 }
 0x18d   :  { %v245_v59 = vpop.f32.mrf.mxu0  ;;  %v322_v18 = vpop.f32.mrf.mxu1 }
 0x18e   :  { %v498_v60 = vmul.f32 -1.442695, %v244_v58  ;;  %v246_v61 = vadd.f32 %v245_v59, %v164_v56  ;;  %v323_v24 = vadd.f32 %v322_v18, %v172_v19 }
 0x18f   :  { %v249_v62 = vpop.f32.mrf.mxu0  ;;  %v326_v22 = vpop.f32.mrf.mxu1 }
 0x190   :  { %586 = vpow2.f32 %v498_v60  ;;  %v499_v63 = vmul.f32 -1.442695, %v246_v61  ;;  %v250_v2 = vadd.f32 %v249_v62, %v160_v55  ;;  %v327_v34 = vadd.f32 %v326_v22, %v168_v21 }
 0x191   :  { %v251_v3 = vpop.f32.mrf.mxu0  ;;  %v328_v27 = vpop.f32.mrf.mxu1 }
 0x192   :  { %588 = vpow2.f32 %v499_v63  ;;  %v500_v4 = vmul.f32 -1.442695, %v250_v2  ;;  %v252_v5 = vadd.f32 %v251_v3, %v164_v56  ;;  %v329_v33 = vadd.f32 %v328_v27, %v172_v19 }
 0x194   :  { %590 = vpow2.f32 %v500_v4  ;;  %v501_v6 = vmul.f32 -1.442695, %v252_v5 }
 0x196   :  { %592 = vpow2.f32 %v501_v6 }
 0x19d   :  { %v587_v7 = vpop.eup %586 }
 0x19e   :  { %v343_v8 = vadd.f32 1.0, %v587_v7 }
 0x19f   :  { %v589_v9 = vpop.eup %588 }
 0x1a0   :  { %594 = vrcp.f32 %v343_v8  ;;  %v344_v10 = vadd.f32 1.0, %v589_v9 }
 0x1a1   :  { %v591_v11 = vpop.eup %590 }
 0x1a2   :  { %596 = vrcp.f32 %v344_v10  ;;  %v345_v12 = vadd.f32 1.0, %v591_v11 }
 0x1a3   :  { %v593_v13 = vpop.eup %592 }
 0x1a4   :  { %598 = vrcp.f32 %v345_v12  ;;  %v346_v14 = vadd.f32 1.0, %v593_v13 }
 0x1a6   :  { %600 = vrcp.f32 %v346_v14 }
 0x1ad   :  { %v595_v20 = vpop.eup %594 }
 0x1ae   :  { %v355_v23 = vmul.f32 %v595_v20, %v244_v58 }
 0x1af   :  { %v597_v0 = vpop.eup %596 }
 0x1b0   :  { %v356_v1 = vmul.f32 %v597_v0, %v246_v61  ;;  %v359_v30 = vmul.f32 %v355_v23, %v321_v26 }
 0x1b1   :  { %v599_v25 = vpop.eup %598 }
 0x1b2   :  { %v360_v28 = vmul.f32 %v356_v1, %v323_v24  ;;  %v357_v31 = vmul.f32 %v599_v25, %v250_v2 }
 0x1b3   :  { %v601_v29 = vpop.eup %600 }
 0x1b4   :  { %v358_v32 = vmul.f32 %v601_v29, %v252_v5  ;;  %466 = vmatprep.mubr.f32.mxu0 %v360_v28  ;;  %v361_v36 = vmul.f32 %v357_v31, %v327_v34 }
 0x1b5   :  { %467 = vmatmul.mubr.f32.vlgmr.msra.gmra.mxu0 %v359_v30 }
 0x1b6   :  { %v362_v35 = vmul.f32 %v358_v32, %v329_v33 }
 0x1b8   :  { %471 = vmatprep.mubr.f32.mxu1 %v362_v35 }
 0x1b9   :  { %472 = vmatmul.mubr.f32.vlgmr.msra.gmra.mxu1 %v361_v36 }
 0x275   :  { %v535_v37 = vpop.f32.mrf.mxu0 }
 0x277   :  { %v536_v39 = vpop.f32.mrf.mxu0 }
 0x278   :  { %v537_v40 = vadd.f32 %v536_v39, %v535_v37 }
 0x279   :  { %v538_v41 = vpop.f32.mrf.mxu1 }
 0x27a   :  { %v469_v42 = vadd.f32 %v537_v40, %v502_v38 }
 0x27b   :  { %v539_v43 = vpop.f32.mrf.mxu1 }
 0x27c   :  { %477 = vst [vmem:[#allocation8] sm:$0xff] %v469_v42  ;;  %v540_v44 = vadd.f32 %v539_v43, %v538_v41 }
 0x27e   :  { %v474_v45 = vadd.f32 %v540_v44, %v502_v38 }
 0x280   :  { %478 = vst [vmem:[#allocation8 + $0x8] sm:$0xff] %v474_v45 }
 0x281   :  { %673 = shalt.err (!%p670_p5)
}
 0x282   :  { %490 = dma.vmem_to_hbm [thread:$0]  %s485_s18, 256, %s778_s6, [#allocation4], %s692_s7, %s692_s7, %s693_s8  }
 0x283   :  { %686 = dma.done.wait [#allocation4], 256  }
 0x284   :  { %687 = vsyncadd [#allocation4], 4294967040 }
 0x285   :  { %494 = vsyncpa [#allocation3], 1 }
 0x286   :  { %495 = vsyncpa [#allocation6], 1 }
 0x287   :  { %496 = vsyncpa [#allocation4], 1 }

</bundles_post_ra>
